<compile_context>
chip_gen: v5e
topology: v5e:2x2
jax: 0.10.0
libtpu: 0.0.40
codegen_flags: <defaults>
</compile_context>

<pallas_src>
import functools

import jax
import jax.numpy as jnp
from jax import lax
from jax.experimental import pallas as pl
from jax.experimental.pallas import tpu as pltpu


def _round_up(x, m):
    return (x + m - 1) // m * m


# ----------------------------------------------------------------------------
# Pallas kernel: fused (im2col-matmul) conv + folded-BN bias + ReLU
# ----------------------------------------------------------------------------
def conv_bn_relu_kernel(patches_ref, w_ref, bias_ref, o_ref):
    # patches: (TM, K) bf16   w: (K, N) bf16 (frozen-BN scale pre-folded)
    # bias:    (1, N)  f32    out: (TM, N) out_dtype (default bf16)
    acc = jnp.dot(patches_ref[...], w_ref[...],
                  preferred_element_type=jnp.float32)
    o_ref[...] = jnp.maximum(acc + bias_ref[...], 0.0).astype(o_ref.dtype)


def _choose_row_tile(M, block_m):
    """Pick the row-tile size TM.

    Goals (perf review):
      * multiple of 16 (bf16 sublane packing),
      * divides M exactly whenever possible (no jnp.pad of the patch tensor and
        no out[:M] slice pass -- both are full extra HBM passes),
      * >= 2 grid steps so the double-buffered pipeline and v7x's two
        TensorCores actually engage (~8 steps for small/medium M),
      * capped at block_m (512-1024 measured sweet spot, never 2048).
    """
    cap = min(block_m, max(512, _round_up(pl.cdiv(M, 8), 16)))
    cap = min(cap, max(16, _round_up(pl.cdiv(M, 2), 16)))   # force >= 2 steps
    cap = min(cap, _round_up(M, 16))
    cap = max(16, cap - cap % 16)
    for t in range(cap, 0, -16):      # <= 64 trace-time iterations
        if M % t == 0:
            return t, M               # exact divisor -> no padding
    return cap, _round_up(M, cap)     # fallback: pad (rare awkward shapes only)


def fused_conv_bn_relu(patches, w, bias, *, block_m=1024,
                       out_dtype=jnp.bfloat16):
    """patches: (M, K) bf16, w: (K, N) bf16, bias: (1, N) f32 -> (M, N) out_dtype."""
    M, K = patches.shape
    N = w.shape[1]
    out_itemsize = jnp.dtype(out_dtype).itemsize

    tm, m_pad = _choose_row_tile(M, block_m)
    if m_pad != M:
        # Fallback only when M has no multiple-of-16 divisor <= block_m.
        patches = jnp.pad(patches, ((0, m_pad - M), (0, 0)))
    grid = (m_pad // tm,)

    cost = pl.CostEstimate(
        flops=2 * m_pad * K * N,
        transcendentals=0,
        bytes_accessed=(m_pad * K * patches.dtype.itemsize
                        + K * N * w.dtype.itemsize
                        + N * 4
                        + m_pad * N * out_itemsize),
    )

    out = pl.pallas_call(
        conv_bn_relu_kernel,
        out_shape=jax.ShapeDtypeStruct((m_pad, N), out_dtype),
        grid=grid,
        in_specs=[
            pl.BlockSpec((tm, K), lambda i: (i, 0)),   # streamed, double-buffered
            pl.BlockSpec((K, N), lambda i: (0, 0)),    # resident
            pl.BlockSpec((1, N), lambda i: (0, 0)),    # resident
        ],
        out_specs=pl.BlockSpec((tm, N), lambda i: (i, 0)),
        compiler_params=pltpu.CompilerParams(
            # Independent row tiles -> v7x's two TensorCores split the grid;
            # neutral (free) on v5e / v6e.
            dimension_semantics=("parallel",),
            # Actual use is ~1-2 MiB at tm <= 1024; 8 MiB gives headroom without
            # starving surrounding XLA fusions (v5e's default scope is 16 MiB).
            vmem_limit_bytes=8 * 1024 * 1024,
        ),
        cost_estimate=cost,
    )(patches, w, bias)
    return out[:M] if m_pad != M else out


# ----------------------------------------------------------------------------
# Glue: im2col (in hw-major row order), mask interpolation (plain JAX)
# ----------------------------------------------------------------------------
def im2col_hwb(x_hwbc, k, stride, pad):
    """(H, W, B, C) -> patches (Ho*Wo*B, k*k*C); row index = (h*Wo + w)*B + b.

    The input was transposed (once, on the small (B,C,H,W) tensor) to
    (H, W, B, C) *before* tap extraction, so the tap stack + reshape here fuse
    into a single pass and the kernel output later reshapes for free to
    (Ho*Wo, B, Cout) -- no transpose over the 9x-larger patch tensor.
    """
    H, W, B, C = x_hwbc.shape
    xp = jnp.pad(x_hwbc, ((pad, pad), (pad, pad), (0, 0), (0, 0)))
    Ho = (H + 2 * pad - k) // stride + 1
    Wo = (W + 2 * pad - k) // stride + 1
    slabs = [xp[di:di + stride * Ho:stride, dj:dj + stride * Wo:stride, :, :]
             for di in range(k) for dj in range(k)]
    p = jnp.stack(slabs, axis=3)                 # (Ho, Wo, B, k*k, C)
    return p.reshape(Ho * Wo * B, k * k * C), Ho, Wo


def interpolate_mask_nearest(mask, Ho, Wo):
    """(B, H, W) bool -> (B, Ho, Wo) bool.

    Matches F.interpolate(mode='nearest') for the integer downsample ratios
    produced by this stem (floor(i * H / Ho) indexing)."""
    B, H, W = mask.shape
    hi = (jnp.arange(Ho) * H // Ho).astype(jnp.int32)
    wi = (jnp.arange(Wo) * W // Wo).astype(jnp.int32)
    return mask[:, hi][:, :, wi]


def visual_backbone_forward(x_nchw, mask, weight_oihw, bn_gamma, bn_beta,
                            bn_mean, bn_var, *, stride=2, pad=1, eps=1e-5,
                            block_m=1024, out_dtype=jnp.bfloat16):
    """Returns [mask_flat (B, H'W') bool, src (H'W', B, Cout) out_dtype].

    Note: conv operands are fed to the MXU in bf16 (f32 accumulation) and the
    feature map is stored in `out_dtype` (bf16 by default, per perf review);
    pass out_dtype=jnp.float32 if bit-closeness to f32 PyTorch conv matters.
    """
    B, Cin, H, W = x_nchw.shape
    Cout, _, kh, kw = weight_oihw.shape
    assert kh == kw
    k = kh

    # NCHW -> (H, W, B, C) once (small tensor), bf16: halves the HBM traffic of
    # the dominant im2col patch stream and feeds the MXU its native dtype.
    x_hwbc = jnp.transpose(x_nchw, (2, 3, 0, 1)).astype(jnp.bfloat16)
    patches, Ho, Wo = im2col_hwb(x_hwbc, k, stride, pad)   # (M, k*k*Cin) bf16

    # weight (Cout, Cin, k, k) -> (k*k*Cin, Cout), inner order [di, dj, cin]
    # matching the patch layout, with the frozen-BN scale folded straight in.
    scale = bn_gamma / jnp.sqrt(bn_var + eps)                  # (Cout,)
    bias = (bn_beta - bn_mean * scale).reshape(1, Cout).astype(jnp.float32)
    w_mat = jnp.transpose(weight_oihw.reshape(Cout, Cin, k * k),
                          (2, 1, 0)).reshape(k * k * Cin, Cout)
    w_mat = (w_mat * scale[None, :]).astype(jnp.bfloat16)

    # Keep the kernel's output last dim a multiple of 128 so stores stay
    # lane-dense (unmasked vst). No-op for Cout = 128.
    n_pad = _round_up(Cout, 128)
    if n_pad != Cout:
        w_mat = jnp.pad(w_mat, ((0, 0), (0, n_pad - Cout)))
        bias = jnp.pad(bias, ((0, 0), (0, n_pad - Cout)))

    y = fused_conv_bn_relu(patches, w_mat, bias, block_m=block_m,
                           out_dtype=out_dtype)                # (M, n_pad)
    if n_pad != Cout:
        y = y[:, :Cout]

    # Rows were built in (h, w, b) order -> this reshape is free. Equivalent to
    # src.flatten(2).permute(2, 0, 1) of the NCHW feature map.
    src = y.reshape(Ho * Wo, B, Cout)

    mask_small = interpolate_mask_nearest(mask, Ho, Wo)        # (B, Ho, Wo)
    mask_flat = mask_small.reshape(B, Ho * Wo)
    return [mask_flat, src]


# ----------------------------------------------------------------------------
# Main
# ----------------------------------------------------------------------------
if __name__ == "__main__":
    key = jax.random.PRNGKey(0)
    k_x, k_w, k_g, k_b, k_m, k_v = jax.random.split(key, 6)

    # Small but non-trivial: M = Ho*Wo*B = 32*32*2 = 2048 rows -> tm=512, 4 grid
    # steps (exercises the double-buffered pipeline + parallel axis; tm divides
    # M exactly so no padding path). Cout=128 keeps the output lane-dense.
    B, Cin, H, W = 2, 3, 64, 64
    Cout, K, STRIDE, PAD = 128, 3, 2, 1

    x = jax.random.normal(k_x, (B, Cin, H, W), dtype=jnp.float32)
    # nested_tensor_from_tensor_list on equal-size images => all-False mask.
    mask = jnp.zeros((B, H, W), dtype=bool)

    # Deterministic synthetic (frozen) backbone parameters.
    weight = jax.random.normal(k_w, (Cout, Cin, K, K), dtype=jnp.float32) * 0.1
    bn_gamma = 1.0 + 0.01 * jax.random.normal(k_g, (Cout,), dtype=jnp.float32)
    bn_beta = 0.01 * jax.random.normal(k_b, (Cout,), dtype=jnp.float32)
    bn_mean = 0.01 * jax.random.normal(k_m, (Cout,), dtype=jnp.float32)
    bn_var = jnp.abs(jax.random.normal(k_v, (Cout,), dtype=jnp.float32)) + 0.5

    fwd = jax.jit(functools.partial(visual_backbone_forward,
                                    stride=STRIDE, pad=PAD))
    mask_flat, src = fwd(x, mask, weight, bn_gamma, bn_beta, bn_mean, bn_var)
    jax.block_until_ready((mask_flat, src))

    # Self-check: XLA conv on the same bf16-rounded operands (the kernel feeds
    # the MXU bf16 with f32 accumulation), f32 epilogue, then rounded to the
    # kernel's bf16 output dtype.
    scale = bn_gamma / jnp.sqrt(bn_var + 1e-5)
    bias = bn_beta - bn_mean * scale
    x_r = x.astype(jnp.bfloat16).astype(jnp.float32)
    w_r = (weight * scale[:, None, None, None]).astype(jnp.bfloat16).astype(jnp.float32)
    y_ref = lax.conv_general_dilated(
        x_r, w_r, window_strides=(STRIDE, STRIDE),
        padding=((PAD, PAD), (PAD, PAD)),
        dimension_numbers=("NCHW", "OIHW", "NCHW"),
        precision=lax.Precision.HIGHEST)
    y_ref = jnp.maximum(y_ref + bias[None, :, None, None], 0.0)
    Ho, Wo = y_ref.shape[2], y_ref.shape[3]
    src_ref = y_ref.reshape(B, Cout, Ho * Wo).transpose(2, 0, 1)
    src_ref_bf16 = src_ref.astype(jnp.bfloat16).astype(jnp.float32)

    assert mask_flat.shape == (B, Ho * Wo) and mask_flat.dtype == jnp.bool_
    assert src.shape == (Ho * Wo, B, Cout) and src.dtype == jnp.bfloat16
    assert jnp.allclose(src.astype(jnp.float32), src_ref_bf16,
                        atol=2e-2, rtol=2e-2)

    print("KERNEL_OK")
</pallas_src>

<mosaic_0001>
module attributes {stable_mosaic.version = 11 : i64} {
  func.func @conv_bn_relu_kernel(%arg0: i32, %arg1: memref<512x27xbf16, #tpu.memory_space<vmem>>, %arg2: memref<27x128xbf16, #tpu.memory_space<vmem>>, %arg3: memref<1x128xf32, #tpu.memory_space<vmem>>, %arg4: memref<512x128xbf16, #tpu.memory_space<vmem>>) attributes {dimension_semantics = [#tpu.dimension_semantics<parallel>], iteration_bounds = array<i64: 4>, scalar_prefetch = 0 : i64, scratch_operands = 0 : i64, tpu.core_type = #tpu.core_type<tc>, window_params = [{transform_indices = @transform_0, window_bounds = array<i64: 512, 27>}, {pipeline_mode = #tpu.pipeline_mode<synchronous>, transform_indices = @transform_1, window_bounds = array<i64: 27, 128>}, {pipeline_mode = #tpu.pipeline_mode<synchronous>, transform_indices = @transform_2, window_bounds = array<i64: 1, 128>}, {transform_indices = @transform_3, window_bounds = array<i64: 512, 128>}]} {
    %c0 = arith.constant 0 : index
    %c0_0 = arith.constant 0 : index
    %0 = vector.load %arg1[%c0, %c0_0] : memref<512x27xbf16, #tpu.memory_space<vmem>>, vector<512x27xbf16>
    %c0_1 = arith.constant 0 : index
    %c0_2 = arith.constant 0 : index
    %1 = vector.load %arg2[%c0_1, %c0_2] : memref<27x128xbf16, #tpu.memory_space<vmem>>, vector<27x128xbf16>
    %cst = arith.constant dense<0.000000e+00> : vector<512x128xf32>
    %2 = tpu.matmul %0, %1, %cst {dimension_numbers = #tpu.dot_dimension_numbers<[1], [0], [0], [1], [0, 0, 1, 1], [], []>} : vector<512x27xbf16>, vector<27x128xbf16>, vector<512x128xf32> -> vector<512x128xf32>
    %c0_3 = arith.constant 0 : index
    %c0_4 = arith.constant 0 : index
    %3 = vector.load %arg3[%c0_3, %c0_4] : memref<1x128xf32, #tpu.memory_space<vmem>>, vector<1x128xf32>
    %4 = vector.broadcast %3 : vector<1x128xf32> to vector<512x128xf32>
    %5 = arith.addf %2, %4 : vector<512x128xf32>
    %cst_5 = arith.constant 0.000000e+00 : f32
    %6 = vector.broadcast %cst_5 : f32 to vector<512x128xf32>
    %7 = arith.maximumf %5, %6 : vector<512x128xf32>
    %8 = arith.truncf %7 : vector<512x128xf32> to vector<512x128xbf16>
    %c0_6 = arith.constant 0 : index
    %c0_7 = arith.constant 0 : index
    %9 = vector.load %arg4[%c0_6, %c0_7] : memref<512x128xbf16, #tpu.memory_space<vmem>>, vector<512x128xbf16>
    tpu.vector_store %arg4[%c0_6, %c0_7], %8 {strides = array<i32>} : memref<512x128xbf16, #tpu.memory_space<vmem>>, vector<512x128xbf16>,
    return
  }
  func.func @transform_0(%arg0: i32) -> (i32, i32) {
    %c0_i32 = arith.constant 0 : i32
    %c0_i32_0 = arith.constant 0 : i32
    return %arg0, %c0_i32 : i32, i32
  }
  func.func @transform_1(%arg0: i32) -> (i32, i32) {
    %c0_i32 = arith.constant 0 : i32
    %c0_i32_0 = arith.constant 0 : i32
    %c0_i32_1 = arith.constant 0 : i32
    return %c0_i32, %c0_i32_0 : i32, i32
  }
  func.func @transform_2(%arg0: i32) -> (i32, i32) {
    %c0_i32 = arith.constant 0 : i32
    %c0_i32_0 = arith.constant 0 : i32
    %c0_i32_1 = arith.constant 0 : i32
    return %c0_i32, %c0_i32_0 : i32, i32
  }
  func.func @transform_3(%arg0: i32) -> (i32, i32) {
    %c0_i32 = arith.constant 0 : i32
    %c0_i32_0 = arith.constant 0 : i32
    return %arg0, %c0_i32 : i32, i32
  }
}

</mosaic_0001>

<bundles_post_ra>
// kernel: visual_backbone_forward.1
= control target key start
LH: loop header
LB: loop body
LE: loop exit
PB: predicated region body
PF: predicated region fallthrough
CT: control target
= control target key end

     0   :  { %8 = vsyncpa [#allocation3], 0  ;;  %s1768_s0 = inlined_call_operand.vmem [shape: bf16[2048,27], index: 0, kind: input, shape index: {}]   ;;  %s1769_s1 = inlined_call_operand.vmem [shape: bf16[27,128], index: 1, kind: input, shape index: {}]   ;;  %s1770_s2 = inlined_call_operand.vmem [shape: f32[1,128], index: 2, kind: input, shape index: {}]   ;;  %s1771_s3 = inlined_call_operand.hbm [shape: bf16[2048,128], index: 3, kind: output, shape index: {}]  }
   0x1   :  { %10 = vsyncpa [#allocation3 + $0x1], 0  ;;  %s1501_s12 = smov 0   ;;  %s1503_s13 = smov 0  }
   0x2   :  { %s1505_s14 = smov 0   ;;  %s1507_s15 = smov 0  }
   0x3 LB: > { %s1522_s16 = sadd.s32 4294967295, %s1476_s15   ;;  %s959_s17 = sadd.s32 4294967294, %s1476_s15   ;;  %s1476_s15 = sphi %s1507_s15, %s1777_s15   ;;  %s1472_s14 = sphi %s1505_s14, %s1776_s14   ;;  %s1468_s13 = sphi %s1503_s13, %s1775_s13   ;;  %s1464_s12 = sphi %s1501_s12, %s1774_s12  }
   0x4   : > { %s1526_s18 = sadd.s32 1, %s1476_s15   ;;  %s91_s19 = sadd.s32 1, %s1472_s14 }
   0x5   : > { %s88_s20 = ssub.s32 %s1476_s15, %s1526_s18  ;;  %p101_p0 = scmp.ne.s32.totalorder %s1472_s14, %s1468_s13 }
   0x6   : > { %p89_p1 = scmp.eq.s32.totalorder %s88_s20, 0  ;;  %p102_p2 = scmp.eq.s32.totalorder %s1522_s16, 3 }
   0x7   : > { %p107_p3 = scmp.ne.s32.totalorder %s1468_s13, %s1464_s12  ;;  %p108_p4 = scmp.eq.s32.totalorder %s959_s17, 3 }
   0x8   : > { %s1537_s21 = scalar_select %p89_p1, %s1472_s14, %s91_s19  }
   0x9   : > { %p1539_p5 = por %p102_p2, %p101_p0  ;;  %p1543_p6 = por %p108_p4, %p107_p3 }
   0xa   : > { %p962_p7 = scmp.ge.s32.totalorder %s1476_s15, 1  ;;  %p141_p8 = scmp.lt.s32.totalorder %s1476_s15, 5 }
   0xc   : > { %p142_p9 = pnand %p962_p7, %p141_p8 }
   0xd   : > { %s964_s28 = sshll.u32 (!%p142_p9), %s1522_s16, 6  ;;  %s162_s10 = sand.u32 (!%p142_p9), 1, %s1468_s13  }
   0xe   : > { %145 = sbr.rel (%p142_p9) target bundleno = 296 (0x128), region = 32  ;;  %p166_p10 = scmp.lt.s32.totalorder (!%p142_p9), %s964_s28, 255 }
   0xf   : > { %s963_s11 = sshll.u32 (!%p142_p9), %s162_s10, 8  ;;  %s1173_s19 = sshll.u32 (!%p142_p9), %s1522_s16, 8 }
  0x10   : > { %s1642_s17 = scalar_lea.vmem (!%p142_p9), [#allocation2], %s963_s11  ;;  %s893_s25 = scalar_lea.hbm (!%p142_p9), %s1771_s3, %s1173_s19 }
  0x11   : > { %s894_s16 = sshll.u32 (!%p142_p9), %s1642_s17, 4  ;;  %s896_s26 = sshll.u32 (!%p142_p9), %s893_s25, 4  ;;  %s895_s16 = int_to_ptr.vmem [resolvable:$true] %s894_s16  ;;  %s897_s26 = int_to_ptr.hbm [resolvable:$true] %s896_s26 }
  0x12   : > { %s882_s27 = scalar_lea.sflag (!%p142_p9), [#allocation3], %s162_s10  ;;  %s1434_s5 = scalar_lea.hbm (!%p142_p9), %s1771_s3, 1024 }
  0x13   : > { %v1100_v0 = vld [vmem:[%s1769_s1 + $0x8] sm:$0xf]  ;;  %v1172_v1 = vld [vmem:[%s1769_s1 + $0x8] sm:$0x30]  ;;  %vm513_vm0 = vcmask 1044480   ;;  %vm514_vm1 = vcmask 1045504  }
  0x14   : > { %v1101_v2 = vor.u32 %v1172_v1, %v1100_v0  ;;  %v1478_v3 = vmov 65535   ;;  %s1779_s28 = smov (!%p166_p10, %s964_s28), 255  ;;  %v1171_v7 = vld [vmem:[%s1769_s1] sm:$0xff]  ;;  %vm416_vm2 = vcmask 220160  }
  0x15   : > { %v515_v4 = vsel %vm513_vm0, 4294967295, %v1478_v3  ;;  %s965_s4 = sshll.u32 %s1779_s28, 2  ;;  %v1631_v42 = vld [vmem:[%s1770_s2] ss:$0 sm:$0xff]  ;;  %s1428_s28 = sshra.s32 %s897_s26, 4  ;;  %s1429_s28 = int_to_ptr.hbm [resolvable:$true] %s1428_s28 }
  0x16   : > { %v516_v5 = vsel %vm514_vm1, %v515_v4, 0  ;;  %s1562_s7 = scalar_lea.vmem %s1768_s0, %s965_s4  ;;  %s1430_s29 = scalar_lea.hbm %s1429_s28, 256 }
  0x17   : > { %v518_v6 = vand.u32 %v1101_v2, %v516_v5  ;;  %v1139_v8 = vld [vmem:[%s1562_s7] sm:$0xff]  ;;  %v1140_v12 = vld [vmem:[%s1562_s7 + $0x8] sm:$0xff]  ;;  %v1141_v16 = vld [vmem:[%s1562_s7 + $0x10] sm:$0xff]  ;;  %p1431_p11 = scmp.ne.s32.totalorder %s1429_s28, %s1430_s29  ;;  %p1435_p0 = scmp.lt.s32.totalorder %s1429_s28, %s1771_s3 }
  0x18   : > { %v1147_v9 = vld [vmem:[%s1562_s7 + $0x40] sm:$0xff]  ;;  %v1148_v13 = vld [vmem:[%s1562_s7 + $0x48] sm:$0xff]  ;;  %v1149_v17 = vld [vmem:[%s1562_s7 + $0x50] sm:$0xff]  ;;  %p1436_p1 = scmp.lt.s32.totalorder %s1434_s5, %s1430_s29 }
  0x19   : > { %526 = vmatpush.bf16.msra.mxu0 %v518_v6  ;;  %1365 = vmatpush.bf16.msra.mxu1 %v518_v6  ;;  %v1155_v10 = vld [vmem:[%s1562_s7 + $0x80] sm:$0xff]  ;;  %v1156_v14 = vld [vmem:[%s1562_s7 + $0x88] sm:$0xff]  ;;  %v1157_v18 = vld [vmem:[%s1562_s7 + $0x90] sm:$0xff]  ;;  %p1432_p12 = pnand %p1431_p11, %p1539_p5 }
  0x1a   : > { %1366 = vmatpush.bf16.msra.mxu2 %v518_v6  ;;  %1367 = vmatpush.bf16.msra.mxu3 %v518_v6  ;;  %v1163_v11 = vld [vmem:[%s1562_s7 + $0xc0] sm:$0xff]  ;;  %v1164_v15 = vld [vmem:[%s1562_s7 + $0xc8] sm:$0xff]  ;;  %v1165_v19 = vld [vmem:[%s1562_s7 + $0xd0] sm:$0xff]  ;;  %p1437_p2 = por %p1436_p1, %p1435_p0 }
  0x1b   : > { %v1142_v20 = vld [vmem:[%s1562_s7 + $0x18] sm:$0xff]  ;;  %v1143_v24 = vld [vmem:[%s1562_s7 + $0x20] sm:$0xff]  ;;  %v1144_v28 = vld [vmem:[%s1562_s7 + $0x28] sm:$0xff]  ;;  %p1433_p13 = pneg %p1432_p12 }
  0x1c   : > { %v1150_v21 = vld [vmem:[%s1562_s7 + $0x58] sm:$0xff]  ;;  %v1151_v25 = vld [vmem:[%s1562_s7 + $0x60] sm:$0xff]  ;;  %v1152_v29 = vld [vmem:[%s1562_s7 + $0x68] sm:$0xff] }
  0x1d   : > { %527 = vmatpush.bf16.msra.mxu0 %v1171_v7  ;;  %1368 = vmatpush.bf16.msra.mxu1 %v1171_v7  ;;  %v1158_v22 = vld [vmem:[%s1562_s7 + $0x98] sm:$0xff]  ;;  %v1159_v26 = vld [vmem:[%s1562_s7 + $0xa0] sm:$0xff]  ;;  %v1160_v30 = vld [vmem:[%s1562_s7 + $0xa8] sm:$0xff]  ;;  %p1438_p3 = pnand %p1437_p2, %p1433_p13 }
  0x1e   : > { %1369 = vmatpush.bf16.msra.mxu2 %v1171_v7  ;;  %1370 = vmatpush.bf16.msra.mxu3 %v1171_v7  ;;  %v1166_v23 = vld [vmem:[%s1562_s7 + $0xd8] sm:$0xff]  ;;  %v1167_v27 = vld [vmem:[%s1562_s7 + $0xe0] sm:$0xff]  ;;  %v1168_v31 = vld [vmem:[%s1562_s7 + $0xe8] sm:$0xff] }
  0x1f   : > { %v1145_v32 = vld [vmem:[%s1562_s7 + $0x30] sm:$0xff]  ;;  %v1146_v36 = vld [vmem:[%s1562_s7 + $0x38] sm:$0xff] }
  0x20   : > { %1102 = vmatmul.msk.bf16.vlgmr.msra.gmra.mxu0 %vm416_vm2, %v1139_v8  ;;  %1110 = vmatmul.msk.bf16.vlgmr.msra.gmra.mxu1 %vm416_vm2, %v1147_v9  ;;  %v1153_v33 = vld [vmem:[%s1562_s7 + $0x70] sm:$0xff]  ;;  %v1154_v37 = vld [vmem:[%s1562_s7 + $0x78] sm:$0xff] }
  0x21   : > { %1118 = vmatmul.msk.bf16.vlgmr.msra.gmra.mxu2 %vm416_vm2, %v1155_v10  ;;  %1126 = vmatmul.msk.bf16.vlgmr.msra.gmra.mxu3 %vm416_vm2, %v1163_v11  ;;  %v1161_v34 = vld [vmem:[%s1562_s7 + $0xb0] sm:$0xff]  ;;  %v1162_v38 = vld [vmem:[%s1562_s7 + $0xb8] sm:$0xff] }
  0x22   : > { %v1169_v35 = vld [vmem:[%s1562_s7 + $0xf0] sm:$0xff]  ;;  %v1170_v39 = vld [vmem:[%s1562_s7 + $0xf8] sm:$0xff] }
  0x30   : > { %1103 = vmatmul.msk.bf16.gmra.mxu0 %vm416_vm2, %v1140_v12  ;;  %1111 = vmatmul.msk.bf16.gmra.mxu1 %vm416_vm2, %v1148_v13 }
  0x31   : > { %1119 = vmatmul.msk.bf16.gmra.mxu2 %vm416_vm2, %v1156_v14  ;;  %1127 = vmatmul.msk.bf16.gmra.mxu3 %vm416_vm2, %v1164_v15 }
  0x40   : > { %1104 = vmatmul.msk.bf16.gmra.mxu0 %vm416_vm2, %v1141_v16  ;;  %1112 = vmatmul.msk.bf16.gmra.mxu1 %vm416_vm2, %v1149_v17 }
  0x41   : > { %1120 = vmatmul.msk.bf16.gmra.mxu2 %vm416_vm2, %v1157_v18  ;;  %1128 = vmatmul.msk.bf16.gmra.mxu3 %vm416_vm2, %v1165_v19 }
  0x50   : > { %1105 = vmatmul.msk.bf16.gmra.mxu0 %vm416_vm2, %v1142_v20  ;;  %1113 = vmatmul.msk.bf16.gmra.mxu1 %vm416_vm2, %v1150_v21 }
  0x51   : > { %1121 = vmatmul.msk.bf16.gmra.mxu2 %vm416_vm2, %v1158_v22  ;;  %1129 = vmatmul.msk.bf16.gmra.mxu3 %vm416_vm2, %v1166_v23 }
  0x60   : > { %1106 = vmatmul.msk.bf16.gmra.mxu0 %vm416_vm2, %v1143_v24  ;;  %1114 = vmatmul.msk.bf16.gmra.mxu1 %vm416_vm2, %v1151_v25 }
  0x61   : > { %1122 = vmatmul.msk.bf16.gmra.mxu2 %vm416_vm2, %v1159_v26  ;;  %1130 = vmatmul.msk.bf16.gmra.mxu3 %vm416_vm2, %v1167_v27 }
  0x70   : > { %1107 = vmatmul.msk.bf16.gmra.mxu0 %vm416_vm2, %v1144_v28  ;;  %1115 = vmatmul.msk.bf16.gmra.mxu1 %vm416_vm2, %v1152_v29 }
  0x71   : > { %1123 = vmatmul.msk.bf16.gmra.mxu2 %vm416_vm2, %v1160_v30  ;;  %1131 = vmatmul.msk.bf16.gmra.mxu3 %vm416_vm2, %v1168_v31 }
  0x80   : > { %1108 = vmatmul.msk.bf16.gmra.mxu0 %vm416_vm2, %v1145_v32  ;;  %1116 = vmatmul.msk.bf16.gmra.mxu1 %vm416_vm2, %v1153_v33 }
  0x81   : > { %1124 = vmatmul.msk.bf16.gmra.mxu2 %vm416_vm2, %v1161_v34  ;;  %1132 = vmatmul.msk.bf16.gmra.mxu3 %vm416_vm2, %v1169_v35 }
  0x90   : > { %1109 = vmatmul.msk.bf16.gmra.mxu0 %vm416_vm2, %v1146_v36  ;;  %1117 = vmatmul.msk.bf16.gmra.mxu1 %vm416_vm2, %v1154_v37 }
  0x91   : > { %1125 = vmatmul.msk.bf16.gmra.mxu2 %vm416_vm2, %v1162_v38  ;;  %1133 = vmatmul.msk.bf16.gmra.mxu3 %vm416_vm2, %v1170_v39 }
  0x9d   : > { %v529_v40 = vpop.f32.mrf.mxu0  ;;  %v569_v41 = vpop.f32.mrf.mxu1 }
  0x9e   : > { %v530_v43 = vadd.f32 %v1631_v42, %v529_v40  ;;  %v570_v44 = vadd.f32 %v1631_v42, %v569_v41 }
  0xa0   : > { %v689_v51 = vmax.f32 %v530_v43, 0.0  ;;  %v705_v52 = vmax.f32 %v570_v44, 0.0 }
  0xa4   : > { %v609_v45 = vpop.f32.mrf.mxu2  ;;  %v649_v46 = vpop.f32.mrf.mxu3 }
  0xa5   : > { %v531_v47 = vpop.f32.mrf.mxu0  ;;  %v571_v48 = vpop.f32.mrf.mxu1  ;;  %v610_v57 = vadd.f32 %v1631_v42, %v609_v45  ;;  %v650_v58 = vadd.f32 %v1631_v42, %v649_v46 }
  0xa6   : > { %v532_v49 = vadd.f32 %v1631_v42, %v531_v47  ;;  %v572_v50 = vadd.f32 %v1631_v42, %v571_v48 }
  0xa7   : > { %v721_v1 = vmax.f32 %v610_v57, 0.0  ;;  %v737_v2 = vmax.f32 %v650_v58, 0.0 }
  0xa8   : > { %v690_v53 = vmax.f32 %v532_v49, 0.0  ;;  %v706_v54 = vmax.f32 %v572_v50, 0.0 }
  0xaa   : > { %v1177_v55 = vpack.c.bf16 %v690_v53, %v689_v51  ;;  %v1217_v56 = vpack.c.bf16 %v706_v54, %v705_v52 }
  0xac   : > { %1178 = vst [vmem:[%s1642_s17] sm:$0xff] %v1177_v55   ;;  %v611_v59 = vpop.f32.mrf.mxu2  ;;  %v651_v60 = vpop.f32.mrf.mxu3 }
  0xad   : > { %1341 = vst [vmem:[%s1642_s17 + $0x40] sm:$0xff] %v1217_v56   ;;  %v612_v61 = vadd.f32 %v1631_v42, %v611_v59  ;;  %v652_v62 = vadd.f32 %v1631_v42, %v651_v60  ;;  %v534_v63 = vpop.f32.mrf.mxu0  ;;  %v574_v0 = vpop.f32.mrf.mxu1 }
  0xae   : > { %v535_v7 = vadd.f32 %v1631_v42, %v534_v63  ;;  %v575_v8 = vadd.f32 %v1631_v42, %v574_v0 }
  0xaf   : > { %v722_v3 = vmax.f32 %v612_v61, 0.0  ;;  %v738_v4 = vmax.f32 %v652_v62, 0.0 }
  0xb0   : > { %v691_v15 = vmax.f32 %v535_v7, 0.0  ;;  %v707_v16 = vmax.f32 %v575_v8, 0.0 }
  0xb1   : > { %v1257_v5 = vpack.c.bf16 %v722_v3, %v721_v1  ;;  %v1297_v6 = vpack.c.bf16 %v738_v4, %v737_v2 }
  0xb3   : > { %1349 = vst [vmem:[%s1642_s17 + $0x80] sm:$0xff] %v1257_v5  }
  0xb4   : > { %1357 = vst [vmem:[%s1642_s17 + $0xc0] sm:$0xff] %v1297_v6   ;;  %v614_v9 = vpop.f32.mrf.mxu2  ;;  %v654_v10 = vpop.f32.mrf.mxu3 }
  0xb5   : > { %v536_v11 = vpop.f32.mrf.mxu0  ;;  %v576_v12 = vpop.f32.mrf.mxu1  ;;  %v615_v21 = vadd.f32 %v1631_v42, %v614_v9  ;;  %v655_v22 = vadd.f32 %v1631_v42, %v654_v10 }
  0xb6   : > { %v537_v13 = vadd.f32 %v1631_v42, %v536_v11  ;;  %v577_v14 = vadd.f32 %v1631_v42, %v576_v12 }
  0xb7   : > { %v723_v29 = vmax.f32 %v615_v21, 0.0  ;;  %v739_v30 = vmax.f32 %v655_v22, 0.0 }
  0xb8   : > { %v692_v17 = vmax.f32 %v537_v13, 0.0  ;;  %v708_v18 = vmax.f32 %v577_v14, 0.0 }
  0xba   : > { %v1182_v19 = vpack.c.bf16 %v692_v17, %v691_v15  ;;  %v1222_v20 = vpack.c.bf16 %v708_v18, %v707_v16 }
  0xbc   : > { %1334 = vst [vmem:[%s1642_s17 + $0x8] sm:$0xff] %v1182_v19   ;;  %v616_v23 = vpop.f32.mrf.mxu2  ;;  %v656_v24 = vpop.f32.mrf.mxu3 }
  0xbd   : > { %1342 = vst [vmem:[%s1642_s17 + $0x48] sm:$0xff] %v1222_v20   ;;  %v617_v25 = vadd.f32 %v1631_v42, %v616_v23  ;;  %v657_v26 = vadd.f32 %v1631_v42, %v656_v24  ;;  %v539_v27 = vpop.f32.mrf.mxu0  ;;  %v579_v28 = vpop.f32.mrf.mxu1 }
  0xbe   : > { %v540_v35 = vadd.f32 %v1631_v42, %v539_v27  ;;  %v580_v36 = vadd.f32 %v1631_v42, %v579_v28 }
  0xbf   : > { %v724_v31 = vmax.f32 %v617_v25, 0.0  ;;  %v740_v32 = vmax.f32 %v657_v26, 0.0 }
  0xc0   : > { %v693_v44 = vmax.f32 %v540_v35, 0.0  ;;  %v709_v45 = vmax.f32 %v580_v36, 0.0 }
  0xc1   : > { %v1262_v33 = vpack.c.bf16 %v724_v31, %v723_v29  ;;  %v1302_v34 = vpack.c.bf16 %v740_v32, %v739_v30 }
  0xc3   : > { %1350 = vst [vmem:[%s1642_s17 + $0x88] sm:$0xff] %v1262_v33  }
  0xc4   : > { %1358 = vst [vmem:[%s1642_s17 + $0xc8] sm:$0xff] %v1302_v34   ;;  %v619_v37 = vpop.f32.mrf.mxu2  ;;  %v659_v38 = vpop.f32.mrf.mxu3 }
  0xc5   : > { %v541_v39 = vpop.f32.mrf.mxu0  ;;  %v581_v40 = vpop.f32.mrf.mxu1  ;;  %v620_v50 = vadd.f32 %v1631_v42, %v619_v37  ;;  %v660_v51 = vadd.f32 %v1631_v42, %v659_v38 }
  0xc6   : > { %v542_v41 = vadd.f32 %v1631_v42, %v541_v39  ;;  %v582_v43 = vadd.f32 %v1631_v42, %v581_v40 }
  0xc7   : > { %v725_v58 = vmax.f32 %v620_v50, 0.0  ;;  %v741_v59 = vmax.f32 %v660_v51, 0.0 }
  0xc8   : > { %v694_v46 = vmax.f32 %v542_v41, 0.0  ;;  %v710_v47 = vmax.f32 %v582_v43, 0.0 }
  0xca   : > { %v1187_v48 = vpack.c.bf16 %v694_v46, %v693_v44  ;;  %v1227_v49 = vpack.c.bf16 %v710_v47, %v709_v45 }
  0xcc   : > { %1335 = vst [vmem:[%s1642_s17 + $0x10] sm:$0xff] %v1187_v48   ;;  %v621_v52 = vpop.f32.mrf.mxu2  ;;  %v661_v53 = vpop.f32.mrf.mxu3 }
  0xcd   : > { %1343 = vst [vmem:[%s1642_s17 + $0x50] sm:$0xff] %v1227_v49   ;;  %v622_v54 = vadd.f32 %v1631_v42, %v621_v52  ;;  %v662_v55 = vadd.f32 %v1631_v42, %v661_v53  ;;  %v544_v56 = vpop.f32.mrf.mxu0  ;;  %v584_v57 = vpop.f32.mrf.mxu1 }
  0xce   : > { %v545_v0 = vadd.f32 %v1631_v42, %v544_v56  ;;  %v585_v1 = vadd.f32 %v1631_v42, %v584_v57 }
  0xcf   : > { %v726_v60 = vmax.f32 %v622_v54, 0.0  ;;  %v742_v61 = vmax.f32 %v662_v55, 0.0 }
  0xd0   : > { %v695_v8 = vmax.f32 %v545_v0, 0.0  ;;  %v711_v9 = vmax.f32 %v585_v1, 0.0 }
  0xd1   : > { %v1267_v62 = vpack.c.bf16 %v726_v60, %v725_v58  ;;  %v1307_v63 = vpack.c.bf16 %v742_v61, %v741_v59 }
  0xd3   : > { %1351 = vst [vmem:[%s1642_s17 + $0x90] sm:$0xff] %v1267_v62  }
  0xd4   : > { %1359 = vst [vmem:[%s1642_s17 + $0xd0] sm:$0xff] %v1307_v63   ;;  %v624_v2 = vpop.f32.mrf.mxu2  ;;  %v664_v3 = vpop.f32.mrf.mxu3 }
  0xd5   : > { %v546_v4 = vpop.f32.mrf.mxu0  ;;  %v586_v5 = vpop.f32.mrf.mxu1  ;;  %v625_v14 = vadd.f32 %v1631_v42, %v624_v2  ;;  %v665_v15 = vadd.f32 %v1631_v42, %v664_v3 }
  0xd6   : > { %v547_v6 = vadd.f32 %v1631_v42, %v546_v4  ;;  %v587_v7 = vadd.f32 %v1631_v42, %v586_v5 }
  0xd7   : > { %v727_v22 = vmax.f32 %v625_v14, 0.0  ;;  %v743_v23 = vmax.f32 %v665_v15, 0.0 }
  0xd8   : > { %v696_v10 = vmax.f32 %v547_v6, 0.0  ;;  %v712_v11 = vmax.f32 %v587_v7, 0.0 }
  0xda   : > { %v1192_v12 = vpack.c.bf16 %v696_v10, %v695_v8  ;;  %v1232_v13 = vpack.c.bf16 %v712_v11, %v711_v9 }
  0xdc   : > { %1336 = vst [vmem:[%s1642_s17 + $0x18] sm:$0xff] %v1192_v12   ;;  %v626_v16 = vpop.f32.mrf.mxu2  ;;  %v666_v17 = vpop.f32.mrf.mxu3 }
  0xdd   : > { %1344 = vst [vmem:[%s1642_s17 + $0x58] sm:$0xff] %v1232_v13   ;;  %v627_v18 = vadd.f32 %v1631_v42, %v626_v16  ;;  %v667_v19 = vadd.f32 %v1631_v42, %v666_v17  ;;  %v549_v20 = vpop.f32.mrf.mxu0  ;;  %v589_v21 = vpop.f32.mrf.mxu1 }
  0xde   : > { %v550_v28 = vadd.f32 %v1631_v42, %v549_v20  ;;  %v590_v29 = vadd.f32 %v1631_v42, %v589_v21 }
  0xdf   : > { %v728_v24 = vmax.f32 %v627_v18, 0.0  ;;  %v744_v25 = vmax.f32 %v667_v19, 0.0 }
  0xe0   : > { %v697_v36 = vmax.f32 %v550_v28, 0.0  ;;  %v713_v37 = vmax.f32 %v590_v29, 0.0 }
  0xe1   : > { %v1272_v26 = vpack.c.bf16 %v728_v24, %v727_v22  ;;  %v1312_v27 = vpack.c.bf16 %v744_v25, %v743_v23 }
  0xe3   : > { %1352 = vst [vmem:[%s1642_s17 + $0x98] sm:$0xff] %v1272_v26  }
  0xe4   : > { %1360 = vst [vmem:[%s1642_s17 + $0xd8] sm:$0xff] %v1312_v27   ;;  %v629_v30 = vpop.f32.mrf.mxu2  ;;  %v669_v31 = vpop.f32.mrf.mxu3 }
  0xe5   : > { %v551_v32 = vpop.f32.mrf.mxu0  ;;  %v591_v33 = vpop.f32.mrf.mxu1  ;;  %v630_v43 = vadd.f32 %v1631_v42, %v629_v30  ;;  %v670_v44 = vadd.f32 %v1631_v42, %v669_v31 }
  0xe6   : > { %v552_v34 = vadd.f32 %v1631_v42, %v551_v32  ;;  %v592_v35 = vadd.f32 %v1631_v42, %v591_v33 }
  0xe7   : > { %v729_v51 = vmax.f32 %v630_v43, 0.0  ;;  %v745_v52 = vmax.f32 %v670_v44, 0.0 }
  0xe8   : > { %v698_v38 = vmax.f32 %v552_v34, 0.0  ;;  %v714_v39 = vmax.f32 %v592_v35, 0.0 }
  0xea   : > { %v1197_v40 = vpack.c.bf16 %v698_v38, %v697_v36  ;;  %v1237_v41 = vpack.c.bf16 %v714_v39, %v713_v37 }
  0xec   : > { %1337 = vst [vmem:[%s1642_s17 + $0x20] sm:$0xff] %v1197_v40   ;;  %v631_v45 = vpop.f32.mrf.mxu2  ;;  %v671_v46 = vpop.f32.mrf.mxu3 }
  0xed   : > { %1345 = vst [vmem:[%s1642_s17 + $0x60] sm:$0xff] %v1237_v41   ;;  %v632_v47 = vadd.f32 %v1631_v42, %v631_v45  ;;  %v672_v48 = vadd.f32 %v1631_v42, %v671_v46  ;;  %v554_v49 = vpop.f32.mrf.mxu0  ;;  %v594_v50 = vpop.f32.mrf.mxu1 }
  0xee   : > { %v555_v57 = vadd.f32 %v1631_v42, %v554_v49  ;;  %v595_v58 = vadd.f32 %v1631_v42, %v594_v50 }
  0xef   : > { %v730_v53 = vmax.f32 %v632_v47, 0.0  ;;  %v746_v54 = vmax.f32 %v672_v48, 0.0 }
  0xf0   : > { %v699_v1 = vmax.f32 %v555_v57, 0.0  ;;  %v715_v2 = vmax.f32 %v595_v58, 0.0 }
  0xf1   : > { %v1277_v55 = vpack.c.bf16 %v730_v53, %v729_v51  ;;  %v1317_v56 = vpack.c.bf16 %v746_v54, %v745_v52 }
  0xf3   : > { %1353 = vst [vmem:[%s1642_s17 + $0xa0] sm:$0xff] %v1277_v55  }
  0xf4   : > { %1361 = vst [vmem:[%s1642_s17 + $0xe0] sm:$0xff] %v1317_v56   ;;  %v634_v59 = vpop.f32.mrf.mxu2  ;;  %v674_v60 = vpop.f32.mrf.mxu3 }
  0xf5   : > { %v556_v61 = vpop.f32.mrf.mxu0  ;;  %v596_v62 = vpop.f32.mrf.mxu1  ;;  %v635_v7 = vadd.f32 %v1631_v42, %v634_v59  ;;  %v675_v8 = vadd.f32 %v1631_v42, %v674_v60 }
  0xf6   : > { %v557_v63 = vadd.f32 %v1631_v42, %v556_v61  ;;  %v597_v0 = vadd.f32 %v1631_v42, %v596_v62 }
  0xf7   : > { %v731_v15 = vmax.f32 %v635_v7, 0.0  ;;  %v747_v16 = vmax.f32 %v675_v8, 0.0 }
  0xf8   : > { %v700_v3 = vmax.f32 %v557_v63, 0.0  ;;  %v716_v4 = vmax.f32 %v597_v0, 0.0 }
  0xfa   : > { %v1202_v5 = vpack.c.bf16 %v700_v3, %v699_v1  ;;  %v1242_v6 = vpack.c.bf16 %v716_v4, %v715_v2 }
  0xfc   : > { %1338 = vst [vmem:[%s1642_s17 + $0x28] sm:$0xff] %v1202_v5   ;;  %v636_v9 = vpop.f32.mrf.mxu2  ;;  %v676_v10 = vpop.f32.mrf.mxu3 }
  0xfd   : > { %1346 = vst [vmem:[%s1642_s17 + $0x68] sm:$0xff] %v1242_v6   ;;  %v637_v11 = vadd.f32 %v1631_v42, %v636_v9  ;;  %v677_v12 = vadd.f32 %v1631_v42, %v676_v10  ;;  %v559_v13 = vpop.f32.mrf.mxu0  ;;  %v599_v14 = vpop.f32.mrf.mxu1 }
  0xfe   : > { %v560_v21 = vadd.f32 %v1631_v42, %v559_v13  ;;  %v600_v22 = vadd.f32 %v1631_v42, %v599_v14 }
  0xff   : > { %v732_v17 = vmax.f32 %v637_v11, 0.0  ;;  %v748_v18 = vmax.f32 %v677_v12, 0.0 }
 0x100   : > { %v701_v29 = vmax.f32 %v560_v21, 0.0  ;;  %v717_v30 = vmax.f32 %v600_v22, 0.0 }
 0x101   : > { %v1282_v19 = vpack.c.bf16 %v732_v17, %v731_v15  ;;  %v1322_v20 = vpack.c.bf16 %v748_v18, %v747_v16 }
 0x103   : > { %1354 = vst [vmem:[%s1642_s17 + $0xa8] sm:$0xff] %v1282_v19  }
 0x104   : > { %1362 = vst [vmem:[%s1642_s17 + $0xe8] sm:$0xff] %v1322_v20   ;;  %v639_v23 = vpop.f32.mrf.mxu2  ;;  %v679_v24 = vpop.f32.mrf.mxu3 }
 0x105   : > { %v561_v25 = vpop.f32.mrf.mxu0  ;;  %v601_v26 = vpop.f32.mrf.mxu1  ;;  %v640_v35 = vadd.f32 %v1631_v42, %v639_v23  ;;  %v680_v36 = vadd.f32 %v1631_v42, %v679_v24 }
 0x106   : > { %v562_v27 = vadd.f32 %v1631_v42, %v561_v25  ;;  %v602_v28 = vadd.f32 %v1631_v42, %v601_v26 }
 0x107   : > { %v733_v44 = vmax.f32 %v640_v35, 0.0  ;;  %v749_v45 = vmax.f32 %v680_v36, 0.0 }
 0x108   : > { %v702_v31 = vmax.f32 %v562_v27, 0.0  ;;  %v718_v32 = vmax.f32 %v602_v28, 0.0 }
 0x10a   : > { %v1207_v33 = vpack.c.bf16 %v702_v31, %v701_v29  ;;  %v1247_v34 = vpack.c.bf16 %v718_v32, %v717_v30 }
 0x10c   : > { %1339 = vst [vmem:[%s1642_s17 + $0x30] sm:$0xff] %v1207_v33   ;;  %v641_v37 = vpop.f32.mrf.mxu2  ;;  %v681_v38 = vpop.f32.mrf.mxu3 }
 0x10d   : > { %1347 = vst [vmem:[%s1642_s17 + $0x70] sm:$0xff] %v1247_v34   ;;  %v642_v39 = vadd.f32 %v1631_v42, %v641_v37  ;;  %v682_v40 = vadd.f32 %v1631_v42, %v681_v38  ;;  %v564_v41 = vpop.f32.mrf.mxu0  ;;  %v604_v43 = vpop.f32.mrf.mxu1 }
 0x10e   : > { %v565_v50 = vadd.f32 %v1631_v42, %v564_v41  ;;  %v605_v51 = vadd.f32 %v1631_v42, %v604_v43 }
 0x10f   : > { %v734_v46 = vmax.f32 %v642_v39, 0.0  ;;  %v750_v47 = vmax.f32 %v682_v40, 0.0 }
 0x110   : > { %v703_v58 = vmax.f32 %v565_v50, 0.0  ;;  %v719_v59 = vmax.f32 %v605_v51, 0.0 }
 0x111   : > { %v1287_v48 = vpack.c.bf16 %v734_v46, %v733_v44  ;;  %v1327_v49 = vpack.c.bf16 %v750_v47, %v749_v45 }
 0x113   : > { %1355 = vst [vmem:[%s1642_s17 + $0xb0] sm:$0xff] %v1287_v48  }
 0x114   : > { %1363 = vst [vmem:[%s1642_s17 + $0xf0] sm:$0xff] %v1327_v49   ;;  %v644_v52 = vpop.f32.mrf.mxu2  ;;  %v684_v53 = vpop.f32.mrf.mxu3 }
 0x115   : > { %v566_v54 = vpop.f32.mrf.mxu0  ;;  %v606_v55 = vpop.f32.mrf.mxu1  ;;  %v645_v0 = vadd.f32 %v1631_v42, %v644_v52  ;;  %v685_v1 = vadd.f32 %v1631_v42, %v684_v53 }
 0x116   : > { %v567_v56 = vadd.f32 %v1631_v42, %v566_v54  ;;  %v607_v57 = vadd.f32 %v1631_v42, %v606_v55 }
 0x117   : > { %v735_v6 = vmax.f32 %v645_v0, 0.0  ;;  %v751_v7 = vmax.f32 %v685_v1, 0.0 }
 0x118   : > { %v704_v60 = vmax.f32 %v567_v56, 0.0  ;;  %v720_v61 = vmax.f32 %v607_v57, 0.0 }
 0x11a   : > { %v1212_v62 = vpack.c.bf16 %v704_v60, %v703_v58  ;;  %v1252_v63 = vpack.c.bf16 %v720_v61, %v719_v59 }
 0x11c   : > { %1340 = vst [vmem:[%s1642_s17 + $0x38] sm:$0xff] %v1212_v62   ;;  %v646_v2 = vpop.f32.mrf.mxu2  ;;  %v686_v3 = vpop.f32.mrf.mxu3 }
 0x11d   : > { %1348 = vst [vmem:[%s1642_s17 + $0x78] sm:$0xff] %v1252_v63   ;;  %v647_v4 = vadd.f32 %v1631_v42, %v646_v2  ;;  %v687_v5 = vadd.f32 %v1631_v42, %v686_v3 }
 0x11f   : > { %v736_v8 = vmax.f32 %v647_v4, 0.0  ;;  %v752_v9 = vmax.f32 %v687_v5, 0.0 }
 0x121   : > { %v1292_v10 = vpack.c.bf16 %v736_v8, %v735_v6  ;;  %v1332_v11 = vpack.c.bf16 %v752_v9, %v751_v7 }
 0x123   : > { %1356 = vst [vmem:[%s1642_s17 + $0xb8] sm:$0xff] %v1292_v10  }
 0x124   : > { %1364 = vst [vmem:[%s1642_s17 + $0xf8] sm:$0xff] %v1332_v11  }
 0x125   : > { %1441 = shalt.err (!%p1438_p3)
}
 0x126   : > { %s1479_s8 = smov 64   ;;  %s1480_s9 = smov 4  }
 0x127   : > { %1371 = dma.vmem_to_hbm [thread:$0]  (%p1539_p5), %s895_s16, 4096, %s897_s26, %s882_s27, %s1479_s8, %s1479_s8, %s1480_s9  }
 0x128 PF: > { %p1377_p4 = scmp.ge.s32.totalorder %s1476_s15, 2  ;;  %s911_s10 = sand.u32 1, %s1464_s12  }
 0x129   : > { %s912_s11 = scalar_lea.sflag [#allocation3], %s911_s10 }
 0x12a   : > { %p1374_p7 = pnand %p1377_p4, %p1543_p6 }
 0x12c   : > { %p1375_p8 = pneg %p1374_p7 }
 0x12e   : > { %1459 = dma.done.wait (%p1375_p8), %s912_s11, 4096  }
 0x12f   : > { %1461 = vsyncadd (%p1375_p8), %s912_s11, 4294963200  ;;  %p13_p9 = scmp.ge.s32.totalorder %s1526_s18, 6   ;;  %s1774_s12 = smov %s1468_s13 }
 0x130   : > { %s1775_s13 = smov %s1472_s14  ;;  %s1776_s14 = smov %s1537_s21 }
 0x131   : > { %s1777_s15 = smov %s1526_s18  ;;  %15 = sbr.rel (!%p13_p9) target bundleno = 3 (0x3), region = 67 }
 0x136   :  { %918 = vsyncpa [#allocation3], 1 }
 0x137   :  { %920 = vsyncpa [#allocation3 + $0x1], 1 }

</bundles_post_ra>
